<compile_context>
chip_gen: v5e
topology: v5e:2x2
jax: 0.10.0
libtpu: 0.0.40
codegen_flags: <defaults>
</compile_context>

<pallas_src>
import jax
import jax.numpy as jnp
from jax import lax
from jax.experimental import pallas as pl
from jax.experimental.pallas import tpu as pltpu


def _softplus(x):
    # Numerically stable softplus (matches torch.nn.Softplus / jax.nn.softplus).
    return jnp.maximum(x, 0.0) + jnp.log1p(jnp.exp(-jnp.abs(x)))


# ----------------------------------------------------------------------------
# Stage 1: streaming kernel over V (encoder matmuls + W = softplus(W_tilde))
# ----------------------------------------------------------------------------
def spfa_stream_kernel(x_ref, wmu_ref, wlv_ref, wt_ref,
                       w_ref, mu_part_ref, lv_part_ref):
    v = pl.program_id(1)  # reduction step within this core-split

    @pl.when(v == 0)
    def _init():
        mu_part_ref[...] = jnp.zeros_like(mu_part_ref)
        lv_part_ref[...] = jnp.zeros_like(lv_part_ref)

    x = x_ref[...]                                   # (B, TV) f32
    wmu = wmu_ref[...].astype(jnp.float32)           # (K, TV) bf16 -> f32
    wlv = wlv_ref[...].astype(jnp.float32)

    # Contract on the lane-dense V axis: (B, TV) . (K, TV)^T -> (B, K),
    # accumulated in f32 directly in the resident partial output block.
    dn = (((1,), (1,)), ((), ()))
    mu_part_ref[0] = mu_part_ref[0] + lax.dot_general(
        x, wmu, dn, preferred_element_type=jnp.float32)
    lv_part_ref[0] = lv_part_ref[0] + lax.dot_general(
        x, wlv, dn, preferred_element_type=jnp.float32)

    # Streamed factor loadings W = softplus(W_tilde): lane-dense (K, TV) block.
    w_ref[...] = _softplus(wt_ref[...].astype(jnp.float32))


# ----------------------------------------------------------------------------
# Stage 2: tiny epilogue (combine partials + reparam + dropout + pred head)
# ----------------------------------------------------------------------------
def spfa_head_kernel(mu_part_ref, lv_part_ref, eps_ref, mask_ref, bw_ref, bb_ref,
                     s_ref, mu_ref, lv_ref, yhat_ref):
    mu = jnp.sum(mu_part_ref[...], axis=0)           # (B, K)
    lv = jnp.sum(lv_part_ref[...], axis=0)           # (B, K)

    std = jnp.exp(0.5 * lv)
    s = _softplus(mu + eps_ref[...] * std)

    # Dropout (mask pre-scaled by 1/(1-p)) + prediction head on the VPU.
    s_d = s * mask_ref[...]
    yhat = jnp.sum(s_d * bw_ref[...], axis=-1, keepdims=True) + bb_ref[...]

    mu_ref[...] = mu
    lv_ref[...] = lv
    s_ref[...] = s
    yhat_ref[...] = yhat


# ----------------------------------------------------------------------------
# Tiling plan
# ----------------------------------------------------------------------------
def _round_up(a, m):
    return -(-a // m) * m


def _plan_tiling(V, tv_cap, num_splits):
    """Pick (TV, core_splits, chunks_per_split, V_pad).

    Never requests a single full-V block beyond tv_cap; pads V minimally so
    the grid is rectangular (padding columns are zero and cropped from W).
    """
    c = num_splits if _round_up(V, 128) // 128 >= num_splits else 1
    n_chunks = max(c, -(-V // tv_cap))          # ceil(V / tv_cap), at least c
    n_chunks = _round_up(n_chunks, c)           # even split across cores
    tv = _round_up(-(-V // n_chunks), 128)      # minimal 128-aligned chunk
    v_pad = n_chunks * tv
    return tv, c, n_chunks // c, v_pad


# ----------------------------------------------------------------------------
# Wrapper
# ----------------------------------------------------------------------------
def spfa_forward(x, w_mu, w_lv, w_tilde, beta_w, beta_b, eps, drop_mask_scaled,
                 *, max_tile_v=8192, num_core_splits=2,
                 weight_stream_dtype=jnp.bfloat16):
    """x:(B,V), w_mu/w_lv/w_tilde:(K,V), beta_w:(1,K), beta_b:(1,),
    eps:(B,K), drop_mask_scaled:(B,K)  ->  (s, W, mu, logvar, y_hat)."""
    B, V = x.shape
    K = w_mu.shape[0]
    num_core_splits = max(1, int(num_core_splits))

    # Generation-aware VMEM capacity (v7x has only 64 MiB per TensorCore).
    try:
        vmem_cap = int(pltpu.get_tpu_info().vmem_capacity_bytes)
    except Exception:
        vmem_cap = 64 << 20

    w_itemsize = jnp.dtype(weight_stream_dtype).itemsize
    # Bytes streamed per V column: x (f32) + w_mu/w_lv/w_tilde (stream dtype)
    # + W out (f32).
    col_bytes = B * 4 + 3 * K * w_itemsize + K * 4
    budget = max(vmem_cap - (16 << 20), 8 << 20)
    tv_cap = min(budget // (3 * max(col_bytes, 1)), int(max_tile_v))
    tv_cap = max(128, (tv_cap // 128) * 128)

    TV, C, NV, V_pad = _plan_tiling(V, tv_cap, num_core_splits)

    # Prepare operands: f32 activations, bf16-streamed weights, zero padding
    # of the (reduction) V axis so partial blocks never need masking.
    x = x.astype(jnp.float32)
    if V_pad != V:
        pad = V_pad - V
        x = jnp.pad(x, ((0, 0), (0, pad)))
        w_mu = jnp.pad(w_mu, ((0, 0), (0, pad)))
        w_lv = jnp.pad(w_lv, ((0, 0), (0, pad)))
        w_tilde = jnp.pad(w_tilde, ((0, 0), (0, pad)))
    w_mu_s = w_mu.astype(weight_stream_dtype)
    w_lv_s = w_lv.astype(weight_stream_dtype)
    w_tilde_s = w_tilde.astype(weight_stream_dtype)
    beta_b2 = beta_b.reshape(1, 1).astype(jnp.float32)
    beta_w = beta_w.astype(jnp.float32)
    eps = eps.astype(jnp.float32)
    drop_mask_scaled = drop_mask_scaled.astype(jnp.float32)

    # VMEM budget: double-buffered streamed tiles + in-kernel f32 up-cast /
    # softplus temporaries + tiny resident arrays.
    step_bytes = TV * col_bytes
    temp_bytes = 3 * K * TV * 4
    resident = 4 * (2 * C * B * K)
    vmem_limit = int(min(vmem_cap - (4 << 20),
                         max(2 * step_bytes + temp_bytes + resident + (2 << 20),
                             16 << 20)))

    cost = pl.CostEstimate(
        flops=int(4 * B * V_pad * K),
        transcendentals=int(2 * K * V_pad),
        bytes_accessed=int(B * V_pad * 4 + 3 * K * V_pad * w_itemsize
                           + K * V_pad * 4 + 2 * C * B * K * 4),
    )

    # ---- Stage 1: stream V ----
    W_pad, mu_part, lv_part = pl.pallas_call(
        spfa_stream_kernel,
        out_shape=(
            jax.ShapeDtypeStruct((K, V_pad), jnp.float32),   # W (padded)
            jax.ShapeDtypeStruct((C, B, K), jnp.float32),    # mu partials
            jax.ShapeDtypeStruct((C, B, K), jnp.float32),    # logvar partials
        ),
        grid=(C, NV),
        in_specs=[
            pl.BlockSpec((B, TV), lambda c, v: (0, c * NV + v)),   # x chunk
            pl.BlockSpec((K, TV), lambda c, v: (0, c * NV + v)),   # W_mu chunk
            pl.BlockSpec((K, TV), lambda c, v: (0, c * NV + v)),   # W_lv chunk
            pl.BlockSpec((K, TV), lambda c, v: (0, c * NV + v)),   # W_tilde chunk
        ],
        out_specs=[
            pl.BlockSpec((K, TV), lambda c, v: (0, c * NV + v)),   # W chunk
            pl.BlockSpec((1, B, K), lambda c, v: (c, 0, 0)),       # mu partial
            pl.BlockSpec((1, B, K), lambda c, v: (c, 0, 0)),       # lv partial
        ],
        compiler_params=pltpu.CompilerParams(
            # c: independent per-core split (megacore on v7x);
            # v: the V reduction -> must stay "arbitrary".
            dimension_semantics=("parallel", "arbitrary"),
            vmem_limit_bytes=vmem_limit),
        cost_estimate=cost,
    )(x, w_mu_s, w_lv_s, w_tilde_s)

    W = W_pad if V_pad == V else W_pad[:, :V]

    # ---- Stage 2: combine + reparam + dropout + prediction head ----
    s, mu, logvar, y_hat = pl.pallas_call(
        spfa_head_kernel,
        out_shape=(
            jax.ShapeDtypeStruct((B, K), jnp.float32),   # s
            jax.ShapeDtypeStruct((B, K), jnp.float32),   # mu
            jax.ShapeDtypeStruct((B, K), jnp.float32),   # logvar
            jax.ShapeDtypeStruct((B, 1), jnp.float32),   # y_hat
        ),
        grid=(1,),
        in_specs=[
            pl.BlockSpec((C, B, K), lambda i: (0, 0, 0)),
            pl.BlockSpec((C, B, K), lambda i: (0, 0, 0)),
            pl.BlockSpec((B, K), lambda i: (0, 0)),
            pl.BlockSpec((B, K), lambda i: (0, 0)),
            pl.BlockSpec((1, K), lambda i: (0, 0)),
            pl.BlockSpec((1, 1), lambda i: (0, 0)),
        ],
        out_specs=[
            pl.BlockSpec((B, K), lambda i: (0, 0)),
            pl.BlockSpec((B, K), lambda i: (0, 0)),
            pl.BlockSpec((B, K), lambda i: (0, 0)),
            pl.BlockSpec((B, 1), lambda i: (0, 0)),
        ],
    )(mu_part, lv_part, eps, drop_mask_scaled, beta_w, beta_b2)

    return s, W, mu, logvar, y_hat


if __name__ == "__main__":
    key = jax.random.PRNGKey(0)
    k_x, k_mu, k_lv, k_wt, k_bw, k_bb, k_eps, k_drop = jax.random.split(key, 8)

    B, V, K = 8, 1920, 16        # batch, vocab, num_components
    p_drop = 0.5                 # pred_dropout (module default)

    # x: non-negative count-like data (Poisson factor analysis input).
    x = jax.random.randint(k_x, (B, V), 0, 6).astype(jnp.float32)

    # Deterministic parameter init mirroring the module shapes:
    bound_v = 1.0 / jnp.sqrt(jnp.float32(V))
    w_mu = jax.random.uniform(k_mu, (K, V), jnp.float32, -bound_v, bound_v)
    w_lv = jax.random.uniform(k_lv, (K, V), jnp.float32, -bound_v, bound_v)
    w_tilde = jax.random.uniform(k_wt, (K, V), jnp.float32, 0.0, 1.0)
    bound_k = 1.0 / jnp.sqrt(jnp.float32(K))
    beta_w = jax.random.uniform(k_bw, (1, K), jnp.float32, -bound_k, bound_k)
    beta_b = jax.random.uniform(k_bb, (1,), jnp.float32, -bound_k, bound_k)

    # Stochastic pieces of the forward pass (reparam noise + dropout keep mask).
    eps = jax.random.normal(k_eps, (B, K), jnp.float32)
    keep = jax.random.bernoulli(k_drop, 1.0 - p_drop, (B, K))
    drop_mask_scaled = keep.astype(jnp.float32) / (1.0 - p_drop)

    # max_tile_v=512 forces a multi-chunk, padded, core-split grid at this small
    # V so the streaming/accumulation path is exercised; production sizes use
    # the VMEM-derived default (up to 8192-lane chunks).
    s, W, mu, logvar, y_hat = spfa_forward(
        x, w_mu, w_lv, w_tilde, beta_w, beta_b, eps, drop_mask_scaled,
        max_tile_v=512)
    jax.block_until_ready((s, W, mu, logvar, y_hat))

    # --- Tight check: pure-JAX reference using the same bf16-rounded streaming
    # weights (validates the kernel math exactly). ---
    hp = jax.lax.Precision.HIGHEST
    w_mu_q = w_mu.astype(jnp.bfloat16).astype(jnp.float32)
    w_lv_q = w_lv.astype(jnp.bfloat16).astype(jnp.float32)
    w_tilde_q = w_tilde.astype(jnp.bfloat16).astype(jnp.float32)

    mu_ref = jnp.dot(x, w_mu_q.T, precision=hp)
    lv_ref = jnp.dot(x, w_lv_q.T, precision=hp)
    s_ref = jax.nn.softplus(mu_ref + eps * jnp.exp(0.5 * lv_ref))
    W_ref = jax.nn.softplus(w_tilde_q)
    yhat_ref = jnp.dot(s_ref * drop_mask_scaled, beta_w.T, precision=hp) + beta_b

    assert jnp.allclose(mu, mu_ref, atol=2e-3), float(jnp.max(jnp.abs(mu - mu_ref)))
    assert jnp.allclose(logvar, lv_ref, atol=2e-3), float(jnp.max(jnp.abs(logvar - lv_ref)))
    assert jnp.allclose(s, s_ref, atol=2e-3), float(jnp.max(jnp.abs(s - s_ref)))
    assert jnp.allclose(W, W_ref, atol=1e-5), float(jnp.max(jnp.abs(W - W_ref)))
    assert jnp.allclose(y_hat, yhat_ref, atol=2e-3), float(jnp.max(jnp.abs(y_hat - yhat_ref)))

    # --- Loose check: full-fp32 module semantics; deviation is only the bf16
    # rounding of the streamed weights (intentional bandwidth optimization). ---
    mu_fp32 = jnp.dot(x, w_mu.T, precision=hp)
    W_fp32 = jax.nn.softplus(w_tilde)
    assert jnp.allclose(mu, mu_fp32, atol=5e-2), float(jnp.max(jnp.abs(mu - mu_fp32)))
    assert jnp.allclose(W, W_fp32, atol=5e-3), float(jnp.max(jnp.abs(W - W_fp32)))

    assert s.shape == (B, K) and W.shape == (K, V) and mu.shape == (B, K)
    assert logvar.shape == (B, K) and y_hat.shape == (B, 1)

    print("KERNEL_OK")
</pallas_src>

<mosaic_0001>
module attributes {stable_mosaic.version = 11 : i64} {
  func.func @spfa_stream_kernel(%arg0: i32, %arg1: i32, %arg2: memref<8x512xf32, #tpu.memory_space<vmem>>, %arg3: memref<16x512xbf16, #tpu.memory_space<vmem>>, %arg4: memref<16x512xbf16, #tpu.memory_space<vmem>>, %arg5: memref<16x512xbf16, #tpu.memory_space<vmem>>, %arg6: memref<16x512xf32, #tpu.memory_space<vmem>>, %arg7: memref<1x8x16xf32, #tpu.memory_space<vmem>>, %arg8: memref<1x8x16xf32, #tpu.memory_space<vmem>>) attributes {dimension_semantics = [#tpu.dimension_semantics<parallel>, #tpu.dimension_semantics<arbitrary>], iteration_bounds = array<i64: 2, 2>, scalar_prefetch = 0 : i64, scratch_operands = 0 : i64, tpu.core_type = #tpu.core_type<tc>, window_params = [{transform_indices = @transform_0, window_bounds = array<i64: 8, 512>}, {transform_indices = @transform_1, window_bounds = array<i64: 16, 512>}, {transform_indices = @transform_2, window_bounds = array<i64: 16, 512>}, {transform_indices = @transform_3, window_bounds = array<i64: 16, 512>}, {transform_indices = @transform_4, window_bounds = array<i64: 16, 512>}, {transform_indices = @transform_5, window_bounds = array<i64: 1, 8, 16>}, {transform_indices = @transform_6, window_bounds = array<i64: 1, 8, 16>}]} {
    %c0_i32 = arith.constant 0 : i32
    %0 = arith.cmpi eq, %arg1, %c0_i32 : i32
    %1 = arith.extui %0 : i1 to i32
    %c0_i32_0 = arith.constant 0 : i32
    %2 = arith.cmpi ne, %1, %c0_i32_0 : i32
    scf.if %2 {
      %cst_25 = arith.constant 0.000000e+00 : f32
      %33 = vector.broadcast %cst_25 : f32 to vector<1x8x16xf32>
      %c0_26 = arith.constant 0 : index
      %c0_27 = arith.constant 0 : index
      %c0_28 = arith.constant 0 : index
      %34 = vector.load %arg7[%c0_26, %c0_27, %c0_28] : memref<1x8x16xf32, #tpu.memory_space<vmem>>, vector<1x8x16xf32>
      tpu.vector_store %arg7[%c0_26, %c0_27, %c0_28], %33 {strides = array<i32>} : memref<1x8x16xf32, #tpu.memory_space<vmem>>, vector<1x8x16xf32>,
      %cst_29 = arith.constant 0.000000e+00 : f32
      %35 = vector.broadcast %cst_29 : f32 to vector<1x8x16xf32>
      %c0_30 = arith.constant 0 : index
      %c0_31 = arith.constant 0 : index
      %c0_32 = arith.constant 0 : index
      %36 = vector.load %arg8[%c0_30, %c0_31, %c0_32] : memref<1x8x16xf32, #tpu.memory_space<vmem>>, vector<1x8x16xf32>
      tpu.vector_store %arg8[%c0_30, %c0_31, %c0_32], %35 {strides = array<i32>} : memref<1x8x16xf32, #tpu.memory_space<vmem>>, vector<1x8x16xf32>,
    } else {
    }
    %c0 = arith.constant 0 : index
    %c0_1 = arith.constant 0 : index
    %3 = vector.load %arg2[%c0, %c0_1] : memref<8x512xf32, #tpu.memory_space<vmem>>, vector<8x512xf32>
    %c0_2 = arith.constant 0 : index
    %c0_3 = arith.constant 0 : index
    %4 = vector.load %arg3[%c0_2, %c0_3] : memref<16x512xbf16, #tpu.memory_space<vmem>>, vector<16x512xbf16>
    %5 = arith.extf %4 : vector<16x512xbf16> to vector<16x512xf32>
    %c0_4 = arith.constant 0 : index
    %c0_5 = arith.constant 0 : index
    %6 = vector.load %arg4[%c0_4, %c0_5] : memref<16x512xbf16, #tpu.memory_space<vmem>>, vector<16x512xbf16>
    %7 = arith.extf %6 : vector<16x512xbf16> to vector<16x512xf32>
    %c0_6 = arith.constant 0 : index
    %c0_7 = arith.constant 0 : index
    %c0_8 = arith.constant 0 : index
    %8 = vector.load %arg7[%c0_6, %c0_7, %c0_8] : memref<1x8x16xf32, #tpu.memory_space<vmem>>, vector<1x8x16xf32>
    %9 = vector.shape_cast %8 : vector<1x8x16xf32> to vector<8x16xf32>
    %cst = arith.constant dense<0.000000e+00> : vector<8x16xf32>
    %10 = tpu.matmul %3, %5, %cst {dimension_numbers = #tpu.dot_dimension_numbers<[1], [1], [0], [0], [0, 0, 1, 0], [], []>} : vector<8x512xf32>, vector<16x512xf32>, vector<8x16xf32> -> vector<8x16xf32>
    %11 = arith.addf %9, %10 : vector<8x16xf32>
    %c0_9 = arith.constant 0 : index
    %c0_10 = arith.constant 0 : index
    %c0_11 = arith.constant 0 : index
    %12 = vector.load %arg7[%c0_9, %c0_10, %c0_11] : memref<1x8x16xf32, #tpu.memory_space<vmem>>, vector<1x8x16xf32>
    %13 = vector.shape_cast %12 : vector<1x8x16xf32> to vector<8x16xf32>
    %14 = vector.shape_cast %11 : vector<8x16xf32> to vector<1x8x16xf32>
    tpu.vector_store %arg7[%c0_9, %c0_10, %c0_11], %14 {strides = array<i32>} : memref<1x8x16xf32, #tpu.memory_space<vmem>>, vector<1x8x16xf32>,
    %c0_12 = arith.constant 0 : index
    %c0_13 = arith.constant 0 : index
    %c0_14 = arith.constant 0 : index
    %15 = vector.load %arg8[%c0_12, %c0_13, %c0_14] : memref<1x8x16xf32, #tpu.memory_space<vmem>>, vector<1x8x16xf32>
    %16 = vector.shape_cast %15 : vector<1x8x16xf32> to vector<8x16xf32>
    %cst_15 = arith.constant dense<0.000000e+00> : vector<8x16xf32>
    %17 = tpu.matmul %3, %7, %cst_15 {dimension_numbers = #tpu.dot_dimension_numbers<[1], [1], [0], [0], [0, 0, 1, 0], [], []>} : vector<8x512xf32>, vector<16x512xf32>, vector<8x16xf32> -> vector<8x16xf32>
    %18 = arith.addf %16, %17 : vector<8x16xf32>
    %c0_16 = arith.constant 0 : index
    %c0_17 = arith.constant 0 : index
    %c0_18 = arith.constant 0 : index
    %19 = vector.load %arg8[%c0_16, %c0_17, %c0_18] : memref<1x8x16xf32, #tpu.memory_space<vmem>>, vector<1x8x16xf32>
    %20 = vector.shape_cast %19 : vector<1x8x16xf32> to vector<8x16xf32>
    %21 = vector.shape_cast %18 : vector<8x16xf32> to vector<1x8x16xf32>
    tpu.vector_store %arg8[%c0_16, %c0_17, %c0_18], %21 {strides = array<i32>} : memref<1x8x16xf32, #tpu.memory_space<vmem>>, vector<1x8x16xf32>,
    %c0_19 = arith.constant 0 : index
    %c0_20 = arith.constant 0 : index
    %22 = vector.load %arg5[%c0_19, %c0_20] : memref<16x512xbf16, #tpu.memory_space<vmem>>, vector<16x512xbf16>
    %23 = arith.extf %22 : vector<16x512xbf16> to vector<16x512xf32>
    %cst_21 = arith.constant 0.000000e+00 : f32
    %24 = vector.broadcast %cst_21 : f32 to vector<16x512xf32>
    %25 = arith.maximumf %23, %24 : vector<16x512xf32>
    %26 = math.absf %23 : vector<16x512xf32>
    %cst_22 = arith.constant 0.000000e+00 : f32
    %27 = vector.broadcast %cst_22 : f32 to vector<16x512xf32>
    %28 = arith.subf %27, %26 : vector<16x512xf32>
    %29 = math.exp %28 : vector<16x512xf32>
    %30 = math.log1p %29 : vector<16x512xf32>
    %31 = arith.addf %25, %30 : vector<16x512xf32>
    %c0_23 = arith.constant 0 : index
    %c0_24 = arith.constant 0 : index
    %32 = vector.load %arg6[%c0_23, %c0_24] : memref<16x512xf32, #tpu.memory_space<vmem>>, vector<16x512xf32>
    tpu.vector_store %arg6[%c0_23, %c0_24], %31 {strides = array<i32>} : memref<16x512xf32, #tpu.memory_space<vmem>>, vector<16x512xf32>,
    return
  }
  func.func @transform_0(%arg0: i32, %arg1: i32) -> (i32, i32) {
    %c2_i32 = arith.constant 2 : i32
    %0 = arith.muli %arg0, %c2_i32 : i32
    %1 = arith.addi %0, %arg1 : i32
    %c0_i32 = arith.constant 0 : i32
    %c0_i32_0 = arith.constant 0 : i32
    return %c0_i32, %1 : i32, i32
  }
  func.func @transform_1(%arg0: i32, %arg1: i32) -> (i32, i32) {
    %c2_i32 = arith.constant 2 : i32
    %0 = arith.muli %arg0, %c2_i32 : i32
    %1 = arith.addi %0, %arg1 : i32
    %c0_i32 = arith.constant 0 : i32
    %c0_i32_0 = arith.constant 0 : i32
    return %c0_i32, %1 : i32, i32
  }
  func.func @transform_2(%arg0: i32, %arg1: i32) -> (i32, i32) {
    %c2_i32 = arith.constant 2 : i32
    %0 = arith.muli %arg0, %c2_i32 : i32
    %1 = arith.addi %0, %arg1 : i32
    %c0_i32 = arith.constant 0 : i32
    %c0_i32_0 = arith.constant 0 : i32
    return %c0_i32, %1 : i32, i32
  }
  func.func @transform_3(%arg0: i32, %arg1: i32) -> (i32, i32) {
    %c2_i32 = arith.constant 2 : i32
    %0 = arith.muli %arg0, %c2_i32 : i32
    %1 = arith.addi %0, %arg1 : i32
    %c0_i32 = arith.constant 0 : i32
    %c0_i32_0 = arith.constant 0 : i32
    return %c0_i32, %1 : i32, i32
  }
  func.func @transform_4(%arg0: i32, %arg1: i32) -> (i32, i32) {
    %c2_i32 = arith.constant 2 : i32
    %0 = arith.muli %arg0, %c2_i32 : i32
    %1 = arith.addi %0, %arg1 : i32
    %c0_i32 = arith.constant 0 : i32
    %c0_i32_0 = arith.constant 0 : i32
    return %c0_i32, %1 : i32, i32
  }
  func.func @transform_5(%arg0: i32, %arg1: i32) -> (i32, i32, i32) {
    %c0_i32 = arith.constant 0 : i32
    %c0_i32_0 = arith.constant 0 : i32
    %c0_i32_1 = arith.constant 0 : i32
    return %arg0, %c0_i32, %c0_i32_0 : i32, i32, i32
  }
  func.func @transform_6(%arg0: i32, %arg1: i32) -> (i32, i32, i32) {
    %c0_i32 = arith.constant 0 : i32
    %c0_i32_0 = arith.constant 0 : i32
    %c0_i32_1 = arith.constant 0 : i32
    return %arg0, %c0_i32, %c0_i32_0 : i32, i32, i32
  }
}

</mosaic_0001>

<bundles_post_ra>
// kernel: tpu_custom_call.1
= control target key start
LH: loop header
LB: loop body
LE: loop exit
PB: predicated region body
PF: predicated region fallthrough
CT: control target
= control target key end

     0   :  { %s2136_s0 = inlined_call_operand.hbm [shape: f32[8,2048], index: 0, kind: input, shape index: {}]   ;;  %s2137_s1 = inlined_call_operand.hbm [shape: bf16[16,2048], index: 1, kind: input, shape index: {}]   ;;  %s2138_s2 = inlined_call_operand.hbm [shape: bf16[16,2048], index: 2, kind: input, shape index: {}]   ;;  %s2139_s3 = inlined_call_operand.hbm [shape: bf16[16,2048], index: 3, kind: input, shape index: {}]   ;;  %s2140_s4 = inlined_call_operand.hbm [shape: f32[16,2048], index: 4, kind: output, shape index: {0}]   ;;  %s2141_s5 = inlined_call_operand.hbm [shape: f32[2,8,16], index: 5, kind: output, shape index: {1}]   ;;  %s2142_s6 = inlined_call_operand.hbm [shape: f32[2,8,16], index: 6, kind: output, shape index: {2}]  }
   0x1   :  { %2167 = sst [smem:[#allocation33_spill]] %s2136_s0 }
   0x2   :  { %2168 = sst [smem:[#allocation34_spill]] %s2137_s1 }
   0x3   :  { %2169 = sst [smem:[#allocation35_spill]] %s2141_s5 }
   0x4   :  { %2170 = sst [smem:[#allocation36_spill]] %s2142_s6 }
   0x5   :  { %12 = vsyncpa [#allocation3], 0 }
   0x6   :  { %14 = vsyncpa [#allocation3 + $0x1], 0 }
   0x7   :  { %15 = vsyncpa [#allocation6], 0 }
   0x8   :  { %17 = vsyncpa [#allocation6 + $0x1], 0 }
   0x9   :  { %18 = vsyncpa [#allocation9], 0 }
   0xa   :  { %20 = vsyncpa [#allocation9 + $0x1], 0 }
   0xb   :  { %21 = vsyncpa [#allocation4], 0 }
   0xc   :  { %23 = vsyncpa [#allocation4 + $0x1], 0 }
   0xd   :  { %24 = vsyncpa [#allocation12], 0 }
   0xe   :  { %26 = vsyncpa [#allocation12 + $0x1], 0  ;;  %s1661_s21 = smov 0   ;;  %s1663_s22 = smov 0  }
   0xf   :  { %s1665_s23 = smov 0   ;;  %s1667_s24 = smov 0  }
  0x10   :  { %s1669_s25 = smov 0   ;;  %s1671_s26 = smov 0  }
  0x11   :  { %s1673_s27 = smov 0   ;;  %s1675_s28 = smov 0  }
  0x12   :  { %s1677_s29 = smov 0   ;;  %s1679_s30 = smov 0  }
  0x13   :  { %s1681_s7 = smov 0  }
  0x14 LB: > { %2171 = sst [smem:[#allocation19_spill]] %s1585_s23  ;;  %s1717_s8 = sadd.s32 4294967295, %s1617_s7   ;;  %s1617_s7 = sphi %s1681_s7, %s32_s7   ;;  %s1613_s30 = sphi %s1679_s30, %s2234_s30   ;;  %s1609_s29 = sphi %s1677_s29, %s2228_s29   ;;  %s1605_s28 = sphi %s1675_s28, %s2227_s28   ;;  %s1601_s27 = sphi %s1673_s27, %s2226_s27   ;;  %s1597_s26 = sphi %s1671_s26, %s2225_s26   ;;  %s1593_s25 = sphi %s1669_s25, %s2233_s25   ;;  %s1589_s24 = sphi %s1667_s24, %s2232_s24   ;;  %s1585_s23 = sphi %s1665_s23, %s2223_s23   ;;  %s1581_s22 = sphi %s1663_s22, %s2231_s22   ;;  %s1577_s21 = sphi %s1661_s21, %s2230_s21  }
  0x15   : > { %2172 = sst [smem:[#allocation20_spill]] %s1589_s24  ;;  %s2144_s9 = sadd.s32 4294967294, %s1617_s7  }
  0x16   : > { %2173 = sst [smem:[#allocation21_spill]] %s1597_s26  ;;  %s41_s10 = sadd.s32 1, %s1609_s29 }
  0x17   : > { %2174 = sst [smem:[#allocation22_spill]] %s1609_s29  ;;  %s44_s11 = sadd.s32 1, %s1613_s30 }
  0x18   : > { %2175 = sst [smem:[#allocation23_spill]] %s1613_s30  ;;  %p42_p0 = scmp.ge.s32.totalorder %s41_s10, 2 }
  0x19   : > { %2176 = sst [smem:[#allocation24_spill]] %s1617_s7  ;;  %s1089_s12 = sshll.u32 %s1613_s30, 1 }
  0x1a   : > { %s1724_s13 = sadd.s32 %s1609_s29, %s1089_s12  ;;  %s55_s14 = sadd.s32 1, %s1597_s26 }
  0x1b   : > { %s2236_s10 = smov (%p42_p0, %s41_s10), 0  ;;  %s2238_s11 = smov (!%p42_p0, %s44_s11), %s1613_s30 }
  0x1c   : > { %2177 = sst [smem:[#allocation25_spill]] %s2236_s10  ;;  %p62_p1 = scmp.ne.s32.totalorder %s1597_s26, %s1593_s25 }
  0x1d   : > { %p63_p2 = scmp.eq.s32.totalorder %s1617_s7, 0  ;;  %p46_p3 = scmp.ge.s32.totalorder %s2238_s11, 2 }
  0x1e   : > { %p68_p4 = scmp.ne.s32.totalorder %s1593_s25, %s1589_s24  ;;  %p69_p6 = scmp.eq.s32.totalorder %s1717_s8, 0 }
  0x1f   : > { %p1735_p5 = por %p63_p2, %p62_p1  ;;  %s2240_s11 = smov (%p46_p3, %s2238_s11), 0 }
  0x20   : > { %2179 = sst [smem:[#allocation26_spill]] %s2240_s11  ;;  %p1742_p7 = por %p69_p6, %p68_p4 }
  0x21   : > { %p186_p8 = scmp.eq.s32.totalorder %s1717_s8, 3  ;;  %s1090_s17 = sshll.u32 %s2240_s11, 1 }
  0x22   : > { %p1750_p9 = scmp.eq.s32.totalorder %s2144_s9, 3  ;;  %s51_s19 = sadd.s32 %s1090_s17, %s2236_s10 }
  0x23   : > { %p1757_p10 = por %p186_p8, %p62_p1  ;;  %s52_s12 = ssub.s32 %s1724_s13, %s51_s19 }
  0x24   : > { %p1764_p11 = por %p1750_p9, %p68_p4  ;;  %p53_p12 = scmp.eq.s32.totalorder %s52_s12, 0 }
  0x25   : > { %s2182_s20 = scalar_select %p1757_p10, 1, 0 }
  0x26   : > { %s2184_s29 = scalar_select %p1764_p11, 1, 0 }
  0x27   : > { %2183 = sst [smem:[#allocation27_spill]] %s2182_s20  ;;  %s198_s9 = ssub.s32 %s1613_s30, %s2240_s11 }
  0x28   : > { %2185 = sst [smem:[#allocation28_spill]] %s2184_s29  ;;  %p199_p13 = scmp.eq.s32.totalorder %s198_s9, 0 }
  0x29   : > { %s201_s24 = sadd.s32 1, %s1585_s23  ;;  %p211_p0 = scmp.ne.s32.totalorder %s1585_s23, %s1581_s22 }
  0x2a   : > { %s1772_s6 = scalar_select %p53_p12, %s1597_s26, %s55_s14  }
  0x2b   : > { %s1775_s17 = scalar_select %p199_p13, %s1585_s23, %s201_s24  }
  0x2c   : > { %2186 = sst [smem:[#allocation29_spill]] %s1772_s6  ;;  %p217_p1 = scmp.ne.s32.totalorder %s1581_s22, %s1577_s21 }
  0x2d   : > { %2187 = sst [smem:[#allocation30_spill]] %s1775_s17  ;;  %p1178_p2 = scmp.lt.s32.totalorder %s1617_s7, 4 }
  0x2e   : > { %p1784_p3 = por %p211_p0, %p186_p8  ;;  %p1790_p4 = por %p217_p1, %p1750_p9 }
  0x2f   : > { %s1795_s12 = sand.u32 1, %s1597_s26   ;;  %p1799_p6 = pnand %p1178_p2, %p1735_p5 }
  0x30   : > { %s2188_s19 = scalar_select %p1784_p3, 1, 0 }
  0x31   : > { %s2190_s10 = scalar_select %p1790_p4, 1, 0 }
  0x32   : > { %2189 = sst [smem:[#allocation31_spill]] %s2188_s19  ;;  %s1804_s21 = sshll.u32 %s1795_s12, 5 }
  0x33   : > { %2191 = sst [smem:[#allocation32_spill]] %s2190_s10  ;;  %s286_s9 = sand.u32 1, %s1617_s7  }
  0x34   : > { %s1808_s14 = sshll.u32 %s1724_s13, 4  ;;  %s2193_s1 = sld [smem:[#allocation34_spill]] }
  0x35   : > { %s290_s30 = scalar_lea.vmem [#allocation5], %s1804_s21  ;;  %s287_s17 = scalar_lea.sflag [#allocation6], %s286_s9 }
  0x36   : > { %s300_s6 = sshll.u32 %s290_s30, 4  ;;  %s2158_s23 = smov 1024   ;;  %s301_s6 = int_to_ptr.vmem [resolvable:$true] %s300_s6 }
  0x37   : > { %s2160_s10 = smov 256   ;;  %s2162_s29 = smov 16  }
  0x38   : > { %p1117_p5 = scmp.ge.s32.totalorder %s1617_s7, 1  ;;  %p356_p8 = scmp.lt.s32.totalorder %s1617_s7, 5 }
  0x39   : > { %s1136_s11 = sshll.u32 %s1724_s13, 5  ;;  %s2195_s0 = sld [smem:[#allocation33_spill]] }
  0x3a   : > { %s297_s15 = scalar_lea.hbm %s2193_s1, %s1808_s14  ;;  %p1822_p9 = pnand %p1117_p5, %p356_p8 }
  0x3b   : > { %s298_s26 = sshll.u32 %s297_s15, 4  ;;  %s268_s1 = scalar_lea.vmem [#allocation2], %s1804_s21  ;;  %s299_s26 = int_to_ptr.hbm [resolvable:$true] %s298_s26 }
  0x3c   : > { %1161 = dma.hbm_to_vmem [thread:$0]  (!%p1799_p6), %s299_s26, 512, %s301_s6, %s287_s17, %s2158_s23, %s2160_s10, %s2162_s29  }
  0x3d   : > { %s279_s19 = sshll.u32 %s268_s1, 4  ;;  %s265_s6 = scalar_lea.sflag [#allocation3], %s1795_s12  ;;  %s280_s19 = int_to_ptr.vmem [resolvable:$true] %s279_s19 }
  0x3e   : > { %s321_s13 = scalar_lea.hbm %s2138_s2, %s1808_s14  ;;  %s314_s10 = scalar_lea.vmem [#allocation7], %s1804_s21 }
  0x3f   : > { %s275_s15 = scalar_lea.hbm %s2195_s0, %s1136_s11  ;;  %s324_s29 = sshll.u32 %s314_s10, 4  ;;  %s325_s29 = int_to_ptr.vmem [resolvable:$true] %s324_s29 }
  0x40   : > { %s277_s20 = sshll.u32 %s275_s15, 4  ;;  %s322_s9 = sshll.u32 %s321_s13, 4  ;;  %s278_s20 = int_to_ptr.hbm [resolvable:$true] %s277_s20  ;;  %s323_s9 = int_to_ptr.hbm [resolvable:$true] %s322_s9 }
  0x41   : > { %1158 = dma.hbm_to_vmem [thread:$0]  (!%p1799_p6), %s278_s20, 512, %s280_s19, %s265_s6  }
  0x42   : > { %s2196_s11 = smov 16   ;;  %s2197_s1 = smov 256  }
  0x43   : > { %s2198_s18 = smov 1024   ;;  %s345_s7 = scalar_lea.hbm %s2139_s3, %s1808_s14 }
  0x44   : > { %1164 = dma.hbm_to_vmem [thread:$0]  (!%p1799_p6), %s323_s9, 512, %s325_s29, %s287_s17, %s2198_s18, %s2197_s1, %s2196_s11  }
  0x45   : > { %s346_s5 = sshll.u32 %s345_s7, 4  ;;  %s338_s20 = scalar_lea.vmem [#allocation8], %s1804_s21  ;;  %s347_s5 = int_to_ptr.hbm [resolvable:$true] %s346_s5 }
  0x46   : > { %s348_s19 = sshll.u32 %s338_s20, 4  ;;  %s335_s23 = scalar_lea.sflag [#allocation9], %s1795_s12  ;;  %s349_s19 = int_to_ptr.vmem [resolvable:$true] %s348_s19 }
  0x47   : > { %1167 = dma.hbm_to_vmem [thread:$0]  (!%p1799_p6), %s347_s5, 512, %s349_s19, %s335_s23, %s2198_s18, %s2197_s1, %s2196_s11  }
  0x48   : > { %360 = sbr.rel (%p1822_p9) target bundleno = 272 (0x110), region = 36  ;;  %s1858_s29 = sand.u32 (!%p1822_p9), 1, %s1593_s25  }
  0x49   : > { %s1118_s0 = sshll.u32 (!%p1822_p9), %s1858_s29, 5  ;;  %s363_s7 = scalar_lea.sflag (!%p1822_p9), [#allocation3], %s1858_s29 }
  0x4a   : > { %s1862_s10 = scalar_lea.vmem (!%p1822_p9), [#allocation2], %s1118_s0 }
  0x4d   : > { %1556 = dma.done.wait (%p1742_p7), %s363_s7, 512  }
  0x4e   : > { %1558 = vsyncadd (%p1742_p7), %s363_s7, 4294966784  ;;  %s372_s5 = sand.u32 1, %s1717_s8   ;;  %s376_s12 = scalar_lea.vmem [#allocation5], %s1118_s0 }
  0x4f   : > { %s373_s17 = scalar_lea.sflag [#allocation6], %s372_s5 }
  0x50   : > { %1560 = dma.done.wait (%p1742_p7), %s373_s17, 1024  }
  0x51   : > { %1562 = vsyncadd (%p1742_p7), %s373_s17, 4294966272  ;;  %s1875_s24 = scalar_lea.vmem [#allocation7], %s1118_s0  ;;  %s393_s21 = scalar_lea.sflag [#allocation9], %s1858_s29 }
  0x52   : > { %s1878_s14 = scalar_lea.vmem [#allocation8], %s1118_s0 }
  0x53   : > { %1564 = dma.done.wait (%p1742_p7), %s393_s21, 512  }
  0x54   : > { %1566 = vsyncadd (%p1742_p7), %s393_s21, 4294966784  ;;  %s1122_s30 = sshll.u32 %s1858_s29, 6  ;;  %s441_s6 = sand.u32 1, %s1581_s22  }
  0x55   : > { %s1123_s26 = sshll.u32 %s441_s6, 3  ;;  %s1886_s13 = scalar_lea.vmem [#allocation10], %s1122_s30 }
  0x56   : > { %s1888_s9 = scalar_lea.vmem [#allocation11], %s1123_s26  ;;  %s1890_s11 = scalar_lea.vmem [#allocation13], %s1123_s26 }
  0x57   : > { %p1125_p12 = scmp.ne.s32.totalorder %s1601_s27, 0 }
  0x59   : > { %469 = sbr.rel (%p1125_p12) target bundleno = 97 (0x61), region = 56 }
  0x5e   : > { %vm470_vm0 = vcmask 130048   ;;  %v1622_v0 = vmov 0.0  }
  0x5f   : > { %471 = vst.msk [vmem:[%s1888_s9] sm:$0xff] %vm470_vm0, %v1622_v0 }
  0x60   : > { %472 = vst.msk [vmem:[%s1890_s11] sm:$0xff] %vm470_vm0, %v1622_v0 }
  0x61 PF: > { %v480_v1 = vld [vmem:[%s376_s12 + $0x18] sm:$0xff]  ;;  %v479_v2 = vld [vmem:[%s376_s12 + $0x10] sm:$0xff]  ;;  %v478_v3 = vld [vmem:[%s376_s12 + $0x8] sm:$0xff]  ;;  %s1129_s16 = sshll.u32 %s1605_s28, 1  ;;  %s1132_s19 = sshll.u32 %s1605_s28, 3 }
  0x62   : > { %v487_v4 = vunpack.c.l.bf16 %v480_v1  ;;  %v488_v5 = vunpack.c.h.bf16 %v480_v1  ;;  %v485_v6 = vunpack.c.l.bf16 %v479_v2  ;;  %v486_v7 = vunpack.c.h.bf16 %v479_v2  ;;  %v492_v8 = vld [vmem:[%s1875_s24 + $0x18] sm:$0xff]  ;;  %v477_v9 = vld [vmem:[%s376_s12] sm:$0xff]  ;;  %v491_v14 = vld [vmem:[%s1875_s24 + $0x10] sm:$0xff]  ;;  %s827_s1 = sadd.s32 %s1601_s27, %s1129_s16  ;;  %s833_s23 = sshll.u32 %s1886_s13, 4  ;;  %s2035_s23 = int_to_ptr.vmem [resolvable:$true] %s833_s23 }
  0x63   : > { %v483_v10 = vunpack.c.l.bf16 %v478_v3  ;;  %v484_v11 = vunpack.c.h.bf16 %v478_v3  ;;  %v499_v12 = vunpack.c.l.bf16 %v492_v8  ;;  %v481_v13 = vunpack.c.l.bf16 %v477_v9  ;;  %v490_v17 = vld [vmem:[%s1875_s24 + $0x8] sm:$0xff]  ;;  %v475_v18 = vld [vmem:[%s1862_s10 + $0x10] sm:$0xff]  ;;  %v476_v19 = vld [vmem:[%s1862_s10 + $0x18] sm:$0xff]  ;;  %s1140_s27 = sshll.u32 %s827_s1, 5  ;;  %s2213_s17 = sld [smem:[#allocation35_spill]] }
  0x64   : > { %556 = vmatpush.xpose.msra.mxu2 %v487_v4  ;;  %576 = vmatpush.xpose.msra.mxu3 %v488_v5  ;;  %v482_v15 = vunpack.c.h.bf16 %v477_v9  ;;  %v500_v16 = vunpack.c.h.bf16 %v492_v8  ;;  %v498_v20 = vunpack.c.h.bf16 %v491_v14  ;;  %v473_v21 = vld [vmem:[%s1862_s10] sm:$0xff]  ;;  %v497_v22 = vunpack.c.l.bf16 %v491_v14  ;;  %v474_v24 = vld [vmem:[%s1862_s10 + $0x8] sm:$0xff]  ;;  %v1910_v31 = vld [vmem:[%s1878_s14 + $0x10] sm:$0xff]  ;;  %s832_s20 = scalar_lea.hbm %s2140_s4, %s1140_s27  ;;  %s850_s21 = sshll.u32 %s1888_s9, 4  ;;  %s851_s21 = int_to_ptr.vmem [resolvable:$true] %s850_s21 }
  0x65   : > { %516 = vmatpush.xpose.msra.mxu0 %v485_v6  ;;  %536 = vmatpush.xpose.msra.mxu1 %v486_v7  ;;  %v489_v23 = vld [vmem:[%s1875_s24] sm:$0xff]  ;;  %v495_v25 = vunpack.c.l.bf16 %v490_v17  ;;  %v496_v26 = vunpack.c.h.bf16 %v490_v17  ;;  %v1907_v30 = vld [vmem:[%s1878_s14 + $0x8] sm:$0xff]  ;;  %v1917_v36 = vld [vmem:[%s1878_s14 + $0x18] sm:$0xff]  ;;  %v676_v37 = vunpack.c.l.bf16 %v1910_v31  ;;  %v677_v38 = vunpack.c.h.bf16 %v1910_v31  ;;  %s835_s0 = sshll.u32 %s832_s20, 4  ;;  %s809_s30 = scalar_lea.sflag [#allocation4], %s1858_s29  ;;  %s2037_s0 = int_to_ptr.hbm [resolvable:$true] %s835_s0 }
  0x66   : > { %v494_v27 = vunpack.c.h.bf16 %v489_v23  ;;  %v493_v28 = vunpack.c.l.bf16 %v489_v23  ;;  %v1904_v29 = vld [vmem:[%s1878_s14] sm:$0xff]  ;;  %v674_v34 = vunpack.c.l.bf16 %v1907_v30  ;;  %v675_v35 = vunpack.c.h.bf16 %v1907_v30  ;;  %s1441_s6 = sshra.s32 %s2037_s0, 4  ;;  %s1447_s27 = scalar_lea.hbm %s2140_s4, 256  ;;  %s1442_s6 = int_to_ptr.hbm [resolvable:$true] %s1441_s6 }
  0x67   : > { %v672_v32 = vunpack.c.l.bf16 %v1904_v29  ;;  %v673_v33 = vunpack.c.h.bf16 %v1904_v29  ;;  %v692_v43 = vand.u32 2147483647, %v676_v37  ;;  %v693_v44 = vand.u32 2147483647, %v677_v38  ;;  %s1443_s26 = scalar_lea.hbm %s1442_s6, 64  ;;  %p1448_p1 = scmp.lt.s32.totalorder %s1442_s6, %s2140_s4 }
  0x68   : > { %557 = vmatpush.xpose.msra.mxu2 %v483_v10  ;;  %577 = vmatpush.xpose.msra.mxu3 %v484_v11  ;;  %v690_v41 = vand.u32 2147483647, %v674_v34  ;;  %v691_v42 = vand.u32 2147483647, %v675_v35  ;;  %v678_v45 = vunpack.c.l.bf16 %v1917_v36  ;;  %v679_v54 = vunpack.c.h.bf16 %v1917_v36  ;;  %p1444_p7 = scmp.ne.s32.totalorder %s1442_s6, %s1443_s26  ;;  %p1449_p2 = scmp.lt.s32.totalorder %s1447_s27, %s1443_s26 }
  0x69   : > { %517 = vmatpush.xpose.msra.mxu0 %v481_v13  ;;  %537 = vmatpush.xpose.msra.mxu1 %v482_v15  ;;  %v688_v39 = vand.u32 2147483647, %v672_v32  ;;  %v689_v40 = vand.u32 2147483647, %v673_v33  ;;  %v700_v50 = vsub.f32 0.0, %v692_v43  ;;  %v701_v51 = vsub.f32 0.0, %v693_v44  ;;  %s2031_s12 = scalar_lea.hbm %s2213_s17, %s1132_s19 }
  0x6a   : > { %v698_v48 = vsub.f32 0.0, %v690_v41  ;;  %v699_v49 = vsub.f32 0.0, %v691_v42  ;;  %v694_v57 = vand.u32 2147483647, %v678_v45  ;;  %v695_v60 = vand.u32 2147483647, %v679_v54  ;;  %p1445_p13 = pnand %p1444_p7, %p1757_p10  ;;  %p1450_p6 = por %p1449_p2, %p1448_p1 }
  0x6b   : > { %558 = vmatmul.f32.vlgmr.msra.gmra.mxu2 %v475_v18  ;;  %578 = vmatmul.f32.vlgmr.msra.gmra.mxu3 %v476_v19  ;;  %v696_v46 = vsub.f32 0.0, %v688_v39  ;;  %v697_v47 = vsub.f32 0.0, %v689_v40  ;;  %v712_v58 = vmul.f32 1.442695, %v700_v50  ;;  %v714_v59 = vmul.f32 1.442695, %v701_v51 }
  0x6c   : > { %640 = vmatpush.xpose.msrb.mxu2 %v499_v12  ;;  %660 = vmatpush.xpose.msrb.mxu3 %v500_v16  ;;  %v708_v55 = vmul.f32 1.442695, %v698_v48  ;;  %v710_v56 = vmul.f32 1.442695, %v699_v49  ;;  %v702_v61 = vsub.f32 0.0, %v694_v57  ;;  %v703_v0 = vsub.f32 0.0, %v695_v60  ;;  %p1446_p0 = pneg %p1445_p13 }
  0x6d   : > { %518 = vmatmul.f32.vlgmr.msra.gmra.mxu0 %v473_v21  ;;  %620 = vmatpush.xpose.msrb.mxu1 %v498_v20  ;;  %v704_v52 = vmul.f32 1.442695, %v696_v46  ;;  %v706_v53 = vmul.f32 1.442695, %v697_v47  ;;  %v680_v42 = vmax.f32 %v672_v32, 0.0  ;;  %v681_v43 = vmax.f32 %v673_v33, 0.0 }
  0x6e   : > { %538 = vmatmul.f32.vlgmr.msra.gmra.mxu1 %v474_v24  ;;  %600 = vmatpush.xpose.msrb.mxu0 %v497_v22  ;;  %v716_v3 = vmul.f32 1.442695, %v702_v61  ;;  %v718_v10 = vmul.f32 1.442695, %v703_v0  ;;  %v682_v44 = vmax.f32 %v674_v34, 0.0  ;;  %v683_v46 = vmax.f32 %v675_v35, 0.0  ;;  %p1451_p5 = pnand %p1450_p6, %p1446_p0 }
  0x6f   : > { %1275 = vpow2.f32 %v704_v52  ;;  %v684_v48 = vmax.f32 %v676_v37, 0.0  ;;  %v685_v49 = vmax.f32 %v677_v38, 0.0  ;;  %s852_s14 = sshll.u32 %s2031_s12, 4  ;;  %s853_s14 = int_to_ptr.hbm [resolvable:$true] %s852_s14 }
  0x70   : > { %641 = vmatpush.xpose.msrb.mxu2 %v495_v25  ;;  %661 = vmatpush.xpose.msrb.mxu3 %v496_v26  ;;  %1277 = vpow2.f32 %v706_v53 }
  0x71   : > { %621 = vmatpush.xpose.msrb.mxu1 %v494_v27  ;;  %1279 = vpow2.f32 %v708_v55 }
  0x72   : > { %601 = vmatpush.xpose.msrb.mxu0 %v493_v28  ;;  %1281 = vpow2.f32 %v710_v56 }
  0x73   : > { %642 = vmatmul.f32.vlgmr.msrb.gmra.mxu2 %v475_v18  ;;  %662 = vmatmul.f32.vlgmr.msrb.gmra.mxu3 %v476_v19  ;;  %1283 = vpow2.f32 %v712_v58 }
  0x74   : > { %1285 = vpow2.f32 %v714_v59 }
  0x75   : > { %602 = vmatmul.f32.vlgmr.msrb.gmra.mxu0 %v473_v21  ;;  %v1276_v62 = vpop.eup %1275 }
  0x76   : > { %622 = vmatmul.f32.vlgmr.msrb.gmra.mxu1 %v474_v24  ;;  %v1278_v63 = vpop.eup %1277  ;;  %v720_v1 = vadd.f32 1.0, %v1276_v62  ;;  %v723_v12 = vmul.f32 -0.5, %v1276_v62  ;;  %v726_v21 = vand.u32 2147483647, %v1276_v62 }
  0x77   : > { %v1280_v2 = vpop.eup %1279  ;;  %v729_v4 = vadd.f32 1.0, %v1278_v63  ;;  %v732_v13 = vmul.f32 -0.5, %v1278_v63  ;;  %v735_v25 = vand.u32 2147483647, %v1278_v63 }
  0x78   : > { %v1282_v5 = vpop.eup %1281  ;;  %1287 = vlog2.f32 %v720_v1  ;;  %v738_v6 = vadd.f32 1.0, %v1280_v2  ;;  %v741_v14 = vmul.f32 -0.5, %v1280_v2  ;;  %v724_v17 = vadd.f32 1.0, %v723_v12 }
  0x79   : > { %v1939_v7 = vpop.eup %1283  ;;  %1289 = vlog2.f32 %v729_v4  ;;  %v747_v8 = vadd.f32 1.0, %v1282_v5  ;;  %v750_v15 = vmul.f32 -0.5, %v1282_v5  ;;  %v733_v18 = vadd.f32 1.0, %v732_v13 }
  0x7a   : > { %v1941_v9 = vpop.eup %1285  ;;  %1291 = vlog2.f32 %v738_v6  ;;  %v756_v11 = vadd.f32 1.0, %v1939_v7  ;;  %v742_v19 = vadd.f32 1.0, %v741_v14  ;;  %v725_v24 = vmul.f32 %v1276_v62, %v724_v17 }
  0x7b   : > { %1293 = vpow2.f32 %v716_v3  ;;  %v765_v16 = vadd.f32 1.0, %v1941_v9  ;;  %v734_v27 = vmul.f32 %v1278_v63, %v733_v18  ;;  %v751_v39 = vadd.f32 1.0, %v750_v15 }
  0x7c   : > { %1295 = vlog2.f32 %v747_v8  ;;  %v743_v28 = vmul.f32 %v1280_v2, %v742_v19  ;;  %v759_v40 = vmul.f32 -0.5, %v1939_v7  ;;  %vm1960_vm1 = vcmp.lt.f32.partialorder %v726_v21, 0.0004427343 }
  0x7d   : > { %1297 = vlog2.f32 %v756_v11  ;;  %vm1966_vm2 = vcmp.lt.f32.partialorder %v735_v25, 0.0004427343  ;;  %v744_v35 = vand.u32 2147483647, %v1280_v2  ;;  %v752_v52 = vmul.f32 %v1282_v5, %v751_v39 }
  0x7e   : > { %v1288_v20 = vpop.eup %1287  ;;  %1299 = vlog2.f32 %v765_v16  ;;  %v753_v31 = vand.u32 2147483647, %v1282_v5  ;;  %v760_v38 = vadd.f32 1.0, %v759_v40  ;;  %v762_v57 = vand.u32 2147483647, %v1939_v7 }
  0x7f   : > { %v1290_v22 = vpop.eup %1289  ;;  %1301 = vpow2.f32 %v718_v10  ;;  %v722_v23 = vmul.f32 0.6931472, %v1288_v20  ;;  %vm1971_vm3 = vcmp.lt.f32.partialorder %v744_v35, 0.0004427343  ;;  %v768_v62 = vmul.f32 -0.5, %v1941_v9 }
  0x80   : > { %v1292_v26 = vpop.eup %1291  ;;  %v731_v29 = vmul.f32 0.6931472, %v1290_v22  ;;  %vm1976_vm4 = vcmp.lt.f32.partialorder %v753_v31, 0.0004427343  ;;  %v761_v60 = vmul.f32 %v1939_v7, %v760_v38  ;;  %vm1984_vm5 = vcmp.lt.f32.partialorder %v762_v57, 0.0004427343 }
  0x81   : > { %v1946_v41 = vpop.eup %1293  ;;  %v728_v33 = vsel %vm1960_vm1, %v725_v24, %v722_v23  ;;  %v740_v34 = vmul.f32 0.6931472, %v1292_v26  ;;  %v771_v1 = vand.u32 2147483647, %v1941_v9  ;;  %v769_v5 = vadd.f32 1.0, %v768_v62 }
  0x82   : > { %v1296_v47 = vpop.eup %1295  ;;  %v792_v58 = vadd.f32 %v728_v33, %v680_v42  ;;  %v737_v63 = vsel %vm1966_vm2, %v734_v27, %v731_v29  ;;  %v774_v2 = vadd.f32 1.0, %v1946_v41  ;;  %v777_v6 = vmul.f32 -0.5, %v1946_v41 }
  0x83   : > { %v1298_v32 = vpop.eup %1297  ;;  %v749_v37 = vmul.f32 0.6931472, %v1296_v47  ;;  %v746_v3 = vsel %vm1971_vm3, %v743_v28, %v740_v34  ;;  %vm1997_vm6 = vcmp.lt.f32.partialorder %v771_v1, 0.0004427343  ;;  %v770_v12 = vmul.f32 %v1941_v9, %v769_v5 }
  0x84   : > { %v1300_v51 = vpop.eup %1299  ;;  %v758_v56 = vmul.f32 0.6931472, %v1298_v32  ;;  %800 = vst [vmem:[%s1886_s13] sm:$0xff] %v792_v58  ;;  %1303 = vlog2.f32 %v774_v2  ;;  %v778_v13 = vadd.f32 1.0, %v777_v6  ;;  %v780_v14 = vand.u32 2147483647, %v1946_v41 }
  0x85   : > { %v1302_v53 = vpop.eup %1301  ;;  %v767_v61 = vmul.f32 0.6931472, %v1300_v51  ;;  %v755_v4 = vsel %vm1976_vm4, %v752_v52, %v749_v37  ;;  %v793_v15 = vadd.f32 %v737_v63, %v681_v43  ;;  %v794_v16 = vadd.f32 %v746_v3, %v682_v44 }
  0x86   : > { %v783_v8 = vadd.f32 1.0, %v1302_v53  ;;  %v786_v10 = vmul.f32 -0.5, %v1302_v53  ;;  %v764_v11 = vsel %vm1984_vm5, %v761_v60, %v758_v56  ;;  %v795_v19 = vadd.f32 %v755_v4, %v683_v46 }
  0x87   : > { %v773_v17 = vsel %vm1997_vm6, %v770_v12, %v767_v61  ;;  %v789_v20 = vand.u32 2147483647, %v1302_v53  ;;  %v796_v21 = vadd.f32 %v764_v11, %v684_v48  ;;  %801 = vst [vmem:[%s1886_s13 + $0x8] sm:$0xff] %v793_v15  ;;  %v779_v9 = vmul.f32 %v1946_v41, %v778_v13 }
  0x88   : > { %1305 = vlog2.f32 %v783_v8  ;;  %v787_v18 = vadd.f32 1.0, %v786_v10  ;;  %v797_v22 = vadd.f32 %v773_v17, %v685_v49  ;;  %802 = vst [vmem:[%s1886_s13 + $0x10] sm:$0xff] %v794_v16  ;;  %v686_v24 = vmax.f32 %v678_v45, 0.0  ;;  %v501_v49 = vld [vmem:[%s1888_s9] sm:$0xff] }
  0x89   : > { %vm2016_vm7 = vcmp.lt.f32.partialorder %v780_v14, 0.0004427343  ;;  %803 = vst [vmem:[%s1886_s13 + $0x18] sm:$0xff] %v795_v19  ;;  %v687_v41 = vmax.f32 %v679_v54, 0.0  ;;  %vm790_vm8 = vcmp.lt.f32.partialorder %v789_v20, 0.0004427343 }
  0x8a   : > { %v1304_v23 = vpop.eup %1303  ;;  %v788_v28 = vmul.f32 %v1302_v53, %v787_v18  ;;  %804 = vst [vmem:[%s1886_s13 + $0x20] sm:$0xff] %v796_v21 }
  0x8b   : > { %v776_v27 = vmul.f32 0.6931472, %v1304_v23  ;;  %805 = vst [vmem:[%s1886_s13 + $0x28] sm:$0xff] %v797_v22 }
  0x8d   : > { %v782_v42 = vsel %vm2016_vm7, %v779_v9, %v776_v27 }
  0x8e   : > { %v1306_v39 = vpop.eup %1305  ;;  %v798_v54 = vadd.f32 %v782_v42, %v686_v24 }
  0x8f   : > { %v785_v36 = vmul.f32 0.6931472, %v1306_v39 }
  0x90   : > { %806 = vst [vmem:[%s1886_s13 + $0x30] sm:$0xff] %v798_v54 }
  0x91   : > { %v791_v43 = vsel %vm790_vm8, %v788_v28, %v785_v36 }
  0x92   : > { %v799_v47 = vadd.f32 %v791_v43, %v687_v41 }
  0x94   : > { %807 = vst [vmem:[%s1886_s13 + $0x38] sm:$0xff] %v799_v47 }
  0xea   : > { %v519_v26 = vpop.f32.mrf.mxu0 }
  0xeb   : > { %v539_v40 = vpop.f32.mrf.mxu1 }
  0xec   : > { %v540_v45 = vadd.f32 %v539_v40, %v519_v26 }
  0xee   : > { %v559_v44 = vpop.f32.mrf.mxu2  ;;  %v579_v46 = vpop.f32.mrf.mxu3 }
  0xef   : > { %v560_v48 = vadd.f32 %v559_v44, %v540_v45 }
  0xf1   : > { %v580_v50 = vadd.f32 %v579_v46, %v560_v48 }
  0xf2   : > { %v603_v29 = vpop.f32.mrf.mxu0 }
  0xf3   : > { %1454 = shalt.err (!%p1451_p5)
}
  0xf4   : > { %s1623_s29 = smov 512   ;;  %s1624_s13 = smov 2048   ;;  %v623_v32 = vpop.f32.mrf.mxu1  ;;  %vm583_vm9 = vcmask 130048   ;;  %v582_v33 = vadd.f32 %v580_v50, %v501_v49 }
  0xf5   : > { %s1625_s20 = smov 32   ;;  %v624_v30 = vadd.f32 %v623_v32, %v603_v29  ;;  %s2216_s6 = sld [smem:[#allocation36_spill]] }
  0xf6   : > { %1149 = dma.vmem_to_hbm [thread:$0]  (%p1757_p10), %s2035_s23, 1024, %s2037_s0, %s809_s30, %s1623_s29, %s1624_s13, %s1625_s20   ;;  %v643_v34 = vpop.f32.mrf.mxu2  ;;  %v663_v35 = vpop.f32.mrf.mxu3 }
  0xf7   : > { %584 = vst.msk [vmem:[%s1888_s9] sm:$0xff] %vm583_vm9, %v582_v33  ;;  %s2067_s16 = scalar_lea.sflag [#allocation12], %s372_s5  ;;  %s1469_s23 = sshra.s32 %s853_s14, 4  ;;  %s1470_s23 = int_to_ptr.hbm [resolvable:$true] %s1469_s23 }
  0xf8   : > { %s1471_s0 = scalar_lea.hbm %s1470_s23, 8  ;;  %s1475_s28 = scalar_lea.hbm %s2213_s17, 16 }
  0xf9   : > { %p1472_p10 = scmp.ne.s32.totalorder %s1470_s23, %s1471_s0  ;;  %p1476_p12 = scmp.lt.s32.totalorder %s1470_s23, %s2213_s17 }
  0xfa   : > { %p1477_p7 = scmp.lt.s32.totalorder %s1475_s28, %s1471_s0 }
  0xfb   : > { %s862_s26 = scalar_lea.hbm %s2216_s6, %s1132_s19  ;;  %p1473_p8 = pnand %p1472_p10, %p1784_p3 }
  0xfc   : > { %p1478_p13 = por %p1477_p7, %p1476_p12 }
  0xfd   : > { %p1474_p9 = pneg %p1473_p8 }
  0xff   : > { %p1479_p0 = pnand %p1478_p13, %p1474_p9 }
 0x101   : > { %1482 = shalt.err (!%p1479_p0)
}
 0x102   : > { %1150 = dma.vmem_to_hbm [thread:$0]  (%p1784_p3), %s851_s21, 128, %s853_s14, %s2067_s16   ;;  %v644_v51 = vadd.f32 %v643_v34, %v624_v30  ;;  %v585_v37 = vld [vmem:[%s1890_s11] sm:$0xff] }
 0x103   : > { %s864_s8 = sshll.u32 %s1890_s11, 4  ;;  %s866_s5 = sshll.u32 %s862_s26, 4  ;;  %s865_s8 = int_to_ptr.vmem [resolvable:$true] %s864_s8  ;;  %s867_s5 = int_to_ptr.hbm [resolvable:$true] %s866_s5 }
 0x104   : > { %v664_v52 = vadd.f32 %v663_v35, %v644_v51  ;;  %s1497_s19 = sshra.s32 %s867_s5, 4  ;;  %s1503_s21 = scalar_lea.hbm %s2216_s6, 16  ;;  %s1498_s19 = int_to_ptr.hbm [resolvable:$true] %s1497_s19 }
 0x105   : > { %s1499_s27 = scalar_lea.hbm %s1498_s19, 8  ;;  %p1504_p5 = scmp.lt.s32.totalorder %s1498_s19, %s2216_s6 }
 0x106   : > { %v666_v31 = vadd.f32 %v664_v52, %v585_v37  ;;  %p1500_p1 = scmp.ne.s32.totalorder %s1498_s19, %s1499_s27  ;;  %p1505_p10 = scmp.lt.s32.totalorder %s1503_s21, %s1499_s27 }
 0x108   : > { %667 = vst.msk [vmem:[%s1890_s11] sm:$0xff] %vm583_vm9, %v666_v31  ;;  %p1501_p2 = pnand %p1500_p1, %p1784_p3  ;;  %p1506_p8 = por %p1505_p10, %p1504_p5 }
 0x10a   : > { %p1502_p6 = pneg %p1501_p2 }
 0x10c   : > { %p1507_p9 = pnand %p1506_p8, %p1502_p6 }
 0x10e   : > { %1510 = shalt.err (!%p1507_p9)
}
 0x10f   : > { %1151 = dma.vmem_to_hbm [thread:$0]  (%p1784_p3), %s865_s8, 128, %s867_s5, %s2067_s16  }
 0x110 PF: > { %s2217_s11 = sld [smem:[#allocation24_spill]] }
 0x111   : > { %s2218_s13 = sld [smem:[#allocation20_spill]] }
 0x116   : > { %p1179_p12 = scmp.ge.s32.totalorder %s2217_s11, 2 }
 0x117   : > { %s878_s10 = sand.u32 1, %s2218_s13  }
 0x118   : > { %p1169_p7 = pnand %p1179_p12, %p1764_p11  ;;  %s879_s12 = scalar_lea.sflag [#allocation4], %s878_s10 }
 0x11a   : > { %p1170_p13 = pneg %p1169_p7 }
 0x11c   : > { %1568 = dma.done.wait (%p1170_p13), %s879_s12, 1024  }
 0x11d   : > { %1570 = vsyncadd (%p1170_p13), %s879_s12, 4294966272  ;;  %s2220_s26 = sadd.s32 4294967294, %s2217_s11   ;;  %p1172_p0 = pnand %p1179_p12, %p1790_p4 }
 0x11e   : > { %s888_s0 = sand.u32 1, %s2220_s26  }
 0x11f   : > { %p1173_p1 = pneg %p1172_p0  ;;  %s889_s7 = scalar_lea.sflag [#allocation12], %s888_s0 }
 0x121   : > { %1572 = dma.done.wait (%p1173_p1), %s889_s7, 256  }
 0x122   : > { %1574 = vsyncadd (%p1173_p1), %s889_s7, 4294967040  ;;  %s32_s7 = sadd.s32 1, %s2217_s11   ;;  %s2222_s16 = sld [smem:[#allocation19_spill]] }
 0x123   : > { %p29_p3 = scmp.ge.s32.totalorder %s32_s7, 6   ;;  %s2223_s23 = sld [smem:[#allocation30_spill]] }
 0x124   : > { %s2224_s30 = sld [smem:[#allocation21_spill]]  ;;  %s2230_s21 = smov %s1581_s22 }
 0x125   : > { %s2225_s26 = sld [smem:[#allocation29_spill]]  ;;  %s2232_s24 = smov %s1593_s25 }
 0x126   : > { %s2226_s27 = sld [smem:[#allocation22_spill]] }
 0x127   : > { %s2227_s28 = sld [smem:[#allocation23_spill]] }
 0x128   : > { %s2228_s29 = sld [smem:[#allocation25_spill]]  ;;  %s2231_s22 = smov %s2222_s16 }
 0x129   : > { %s2229_s9 = sld [smem:[#allocation26_spill]] }
 0x12a   : > { %s2233_s25 = smov %s2224_s30 }
 0x12b   :  { %31 = sbr.rel (!%p29_p3) target bundleno = 20 (0x14), region = 154 }
 0x12f   : > { %s2234_s30 = smov %s2229_s9 }
 0x130   :  { %905 = vsyncpa [#allocation3], 1 }
 0x131   :  { %907 = vsyncpa [#allocation3 + $0x1], 1 }
 0x132   :  { %908 = vsyncpa [#allocation6], 1 }
 0x133   :  { %910 = vsyncpa [#allocation6 + $0x1], 1 }
 0x134   :  { %911 = vsyncpa [#allocation9], 1 }
 0x135   :  { %913 = vsyncpa [#allocation9 + $0x1], 1 }
 0x136   :  { %914 = vsyncpa [#allocation4], 1 }
 0x137   :  { %916 = vsyncpa [#allocation4 + $0x1], 1 }
 0x138   :  { %917 = vsyncpa [#allocation12], 1 }
 0x139   :  { %919 = vsyncpa [#allocation12 + $0x1], 1 }

</bundles_post_ra>
